<compile_context>
chip_gen: v5e
topology: v5e:2x2
jax: 0.10.0
libtpu: 0.0.40
codegen_flags: <defaults>
</compile_context>

<pallas_src>
import jax
import jax.numpy as jnp
from jax import lax
from jax.experimental import pallas as pl
from jax.experimental.pallas import tpu as pltpu

B = 16           # batch (one full bf16 sublane group)
D_IN = 1024      # fc3 in_features
D_HID = 256      # fc3 out_features
N_CLASSES = 10   # fc4 out_features
LANES = 128      # lane-padded logits width
BN_EPS = 1e-5
NEG_BIG = -1e9   # sentinel bias for padded class lanes (never wins argmax)

# misc-slab row layout (bf16, D_HID=256 lanes wide):
#   rows [0, LANES)       : fc4 weight, transposed + zero-padded -> (128, 256)
#   row  B3_ROW (=128)    : BN-folded fc3 bias (256 lanes)
#   row  B4_ROW (=129)    : fc4 bias in lanes [0,128): real classes then NEG_BIG
#   rows [130, MISC_ROWS) : zero pad (keeps sublane dim a multiple of 16)
B3_ROW = LANES
B4_ROW = LANES + 1
MISC_ROWS = 144


def classifier_kernel(x_ref, w3_ref, misc_ref, out_ref):
    # (use_drop): Dropout in eval mode is identity.
    # (use_bn):   eval-mode BatchNorm1d + fc3 bias are pre-folded on the host
    #             into w3_ref (bf16) and the misc slab's b3 row.
    # Cast x in-kernel (VPU work rides under MXU/DMA slack; avoids a wrapper op).
    x_bf = x_ref[...].astype(jnp.bfloat16)                               # (B, 1024)

    # fc3 + folded BN + ReLU: bf16 x bf16 on the MXU, f32 accumulate.
    h = jnp.dot(x_bf, w3_ref[...], preferred_element_type=jnp.float32)   # (B, 256)
    b3 = misc_ref[B3_ROW:B3_ROW + 1, :].astype(jnp.float32)               # (1, 256)
    h = jnp.maximum(h + b3, 0.0)

    # fc4 at lane-padded width 128: h(bf16) @ w4^T(bf16), contraction on the
    # shared 256-dim (flash-attention-style A @ B^T), f32 accumulate.
    h_bf = h.astype(jnp.bfloat16)
    w4t = misc_ref[0:LANES, :]                                           # (128, 256)
    logits = lax.dot_general(
        h_bf, w4t,
        dimension_numbers=(((1,), (1,)), ((), ())),
        preferred_element_type=jnp.float32)                              # (B, 128)
    b4 = misc_ref[B4_ROW:B4_ROW + 1, 0:LANES].astype(jnp.float32)        # (1, 128)
    logits = logits + b4   # padded lanes get ~-1e9 -> never win the argmax

    # eval-mode gumbel branch: hard one-hot of argmax(softmax(logits)) ==
    # argmax(logits); first-index tie-break matches torch .max().
    col = lax.broadcasted_iota(jnp.int32, (B, LANES), 1)
    row_max = jnp.max(logits, axis=1, keepdims=True)
    idx = jnp.min(jnp.where(logits == row_max, col, LANES), axis=1, keepdims=True)

    out_ref[0] = logits                                   # slab row 0: logits
    out_ref[1] = (col == idx).astype(jnp.float32)         # slab row 1: one-hot


def classifier_forward(x, folded_params):
    """x: [B, 1024] f32. folded_params from fold_params(). Returns (logits, onehot)."""
    w3q, misc = folded_params

    bytes_accessed = (x.size * 4 + w3q.size * 2 + misc.size * 2 + 2 * B * LANES * 4)
    cost = pl.CostEstimate(
        flops=2 * B * (D_IN * D_HID + D_HID * LANES),
        transcendentals=0,
        bytes_accessed=bytes_accessed,
    )

    out = pl.pallas_call(
        classifier_kernel,
        out_shape=jax.ShapeDtypeStruct((2, B, LANES), jnp.float32),
        in_specs=[pl.BlockSpec(memory_space=pltpu.MemorySpace.VMEM)] * 3,
        out_specs=pl.BlockSpec(memory_space=pltpu.MemorySpace.VMEM),
        cost_estimate=cost,
    )(x, w3q, misc)

    logits = out[0, :, :N_CLASSES]
    onehot = out[1, :, :N_CLASSES]
    return logits, onehot


def fold_params(params):
    """Host-side fold: eval-mode BN into fc3 (bf16) + one bf16 misc slab
    holding [fc4^T (lane-padded) | b3 | b4 (lane-padded, -1e9 sentinel)]."""
    w3, b3, gamma, beta, running_mean, running_var, w4, b4 = params
    scale = gamma * lax.rsqrt(running_var + BN_EPS)                  # [1, 256]
    w3_folded = (w3 * scale).astype(jnp.bfloat16)                    # [1024, 256] bf16
    b3_folded = (b3 - running_mean) * scale + beta                   # [1, 256] f32

    w4t_pad = jnp.zeros((LANES, D_HID), jnp.float32).at[:N_CLASSES, :].set(w4.T)
    b4_pad = jnp.full((LANES,), NEG_BIG, jnp.float32).at[:N_CLASSES].set(b4[0])

    misc = jnp.zeros((MISC_ROWS, D_HID), jnp.float32)
    misc = misc.at[:LANES, :].set(w4t_pad)
    misc = misc.at[B3_ROW, :].set(b3_folded[0])
    misc = misc.at[B4_ROW, :LANES].set(b4_pad)
    return w3_folded, misc.astype(jnp.bfloat16)


def init_params(key):
    k3w, k3b, k4w, k4b, kg, kb, km, kv = jax.random.split(key, 8)
    # Deterministic synthetic init (shapes match nn.Linear / nn.BatchNorm1d;
    # linear weights are stored transposed vs. PyTorch: [in, out]).
    w3 = jax.random.normal(k3w, (D_IN, D_HID), jnp.float32) * (1.0 / jnp.sqrt(D_IN))
    b3 = jax.random.normal(k3b, (1, D_HID), jnp.float32) * 0.01
    w4 = jax.random.normal(k4w, (D_HID, N_CLASSES), jnp.float32) * (1.0 / jnp.sqrt(D_HID))
    b4 = jax.random.normal(k4b, (1, N_CLASSES), jnp.float32) * 0.01
    gamma = 1.0 + 0.1 * jax.random.normal(kg, (1, D_HID), jnp.float32)
    beta = 0.1 * jax.random.normal(kb, (1, D_HID), jnp.float32)
    running_mean = 0.1 * jax.random.normal(km, (1, D_HID), jnp.float32)
    running_var = jnp.abs(1.0 + 0.1 * jax.random.normal(kv, (1, D_HID), jnp.float32))
    return (w3, b3, gamma, beta, running_mean, running_var, w4, b4)


def reference_forward_f32(x, params):
    """Full-precision reference with the original module semantics (eval mode)."""
    w3, b3, gamma, beta, running_mean, running_var, w4, b4 = params
    h = x @ w3 + b3
    h = (h - running_mean) * lax.rsqrt(running_var + BN_EPS) * gamma + beta
    h = jnp.maximum(h, 0.0)
    logits = h @ w4 + b4
    onehot = jax.nn.one_hot(jnp.argmax(logits, axis=1), N_CLASSES, dtype=jnp.float32)
    return logits, onehot


def reference_forward_bf16(x, folded_params):
    """Reference using the same bf16-quantized folded operands as the kernel."""
    w3q, misc = folded_params
    w3f = w3q.astype(jnp.float32)
    w4t = misc[:LANES, :].astype(jnp.float32)          # (128, 256)
    b3 = misc[B3_ROW, :].astype(jnp.float32)           # (256,)
    b4 = misc[B4_ROW, :LANES].astype(jnp.float32)      # (128,)
    xq = x.astype(jnp.bfloat16).astype(jnp.float32)
    h = jnp.maximum(xq @ w3f + b3, 0.0)
    hq = h.astype(jnp.bfloat16).astype(jnp.float32)    # kernel casts h to bf16 too
    logits = (hq @ w4t.T + b4)[:, :N_CLASSES]
    onehot = jax.nn.one_hot(jnp.argmax(logits, axis=1), N_CLASSES, dtype=jnp.float32)
    return logits, onehot


if __name__ == "__main__":
    key = jax.random.PRNGKey(0)
    kx, kp = jax.random.split(key)
    x = jax.random.normal(kx, (B, D_IN), jnp.float32)
    params = init_params(kp)
    folded = fold_params(params)

    logits, onehot = classifier_forward(x, folded)
    jax.block_until_ready((logits, onehot))

    ref_logits, ref_onehot = reference_forward_bf16(x, folded)
    f32_logits, _ = reference_forward_f32(x, params)

    assert logits.shape == (B, N_CLASSES) and onehot.shape == (B, N_CLASSES)
    # Tight check vs. a reference using the same bf16-quantized operands
    # (tolerance covers f32 accumulation-order + h->bf16 double-rounding).
    assert jnp.allclose(logits, ref_logits, atol=1e-2, rtol=1e-2)
    # One-hot must be exactly the hard argmax of the kernel's own logits
    # (first-index tie-break), i.e. the module's eval-mode gumbel branch.
    self_onehot = jax.nn.one_hot(jnp.argmax(logits, axis=1), N_CLASSES,
                                 dtype=jnp.float32)
    assert jnp.array_equal(onehot, self_onehot)
    assert jnp.all(jnp.sum(onehot, axis=1) == 1.0)
    # Loose check vs. the original f32 module semantics (bf16 quantization only).
    assert jnp.allclose(logits, f32_logits, atol=2e-1, rtol=1e-1)

    print("KERNEL_OK")
</pallas_src>

<mosaic_0001>
module attributes {stable_mosaic.version = 11 : i64} {
  func.func @classifier_kernel(%arg0: memref<16x1024xf32, #tpu.memory_space<vmem>>, %arg1: memref<1024x256xbf16, #tpu.memory_space<vmem>>, %arg2: memref<144x256xbf16, #tpu.memory_space<vmem>>, %arg3: memref<2x16x128xf32, #tpu.memory_space<vmem>>) attributes {dimension_semantics = [], scalar_prefetch = 0 : i64, scratch_operands = 0 : i64, tpu.core_type = #tpu.core_type<tc>} {
    %c0 = arith.constant 0 : index
    %c0_0 = arith.constant 0 : index
    %0 = vector.load %arg0[%c0, %c0_0] : memref<16x1024xf32, #tpu.memory_space<vmem>>, vector<16x1024xf32>
    %1 = arith.truncf %0 : vector<16x1024xf32> to vector<16x1024xbf16>
    %c0_1 = arith.constant 0 : index
    %c0_2 = arith.constant 0 : index
    %2 = vector.load %arg1[%c0_1, %c0_2] : memref<1024x256xbf16, #tpu.memory_space<vmem>>, vector<1024x256xbf16>
    %cst = arith.constant dense<0.000000e+00> : vector<16x256xf32>
    %3 = tpu.matmul %1, %2, %cst {dimension_numbers = #tpu.dot_dimension_numbers<[1], [0], [0], [1], [0, 0, 1, 1], [], []>} : vector<16x1024xbf16>, vector<1024x256xbf16>, vector<16x256xf32> -> vector<16x256xf32>
    %c128 = arith.constant 128 : index
    %c0_3 = arith.constant 0 : index
    %4 = vector.load %arg2[%c128, %c0_3] : memref<144x256xbf16, #tpu.memory_space<vmem>>, vector<1x256xbf16>
    %5 = arith.extf %4 : vector<1x256xbf16> to vector<1x256xf32>
    %6 = vector.broadcast %5 : vector<1x256xf32> to vector<16x256xf32>
    %7 = arith.addf %3, %6 : vector<16x256xf32>
    %cst_4 = arith.constant 0.000000e+00 : f32
    %8 = vector.broadcast %cst_4 : f32 to vector<16x256xf32>
    %9 = arith.maximumf %7, %8 : vector<16x256xf32>
    %10 = arith.truncf %9 : vector<16x256xf32> to vector<16x256xbf16>
    %c0_5 = arith.constant 0 : index
    %c0_6 = arith.constant 0 : index
    %11 = vector.load %arg2[%c0_5, %c0_6] : memref<144x256xbf16, #tpu.memory_space<vmem>>, vector<128x256xbf16>
    %cst_7 = arith.constant dense<0.000000e+00> : vector<16x128xf32>
    %12 = tpu.matmul %10, %11, %cst_7 {dimension_numbers = #tpu.dot_dimension_numbers<[1], [1], [0], [0], [0, 0, 1, 0], [], []>} : vector<16x256xbf16>, vector<128x256xbf16>, vector<16x128xf32> -> vector<16x128xf32>
    %c129 = arith.constant 129 : index
    %c0_8 = arith.constant 0 : index
    %13 = vector.load %arg2[%c129, %c0_8] : memref<144x256xbf16, #tpu.memory_space<vmem>>, vector<1x128xbf16>
    %14 = arith.extf %13 : vector<1x128xbf16> to vector<1x128xf32>
    %15 = vector.broadcast %14 : vector<1x128xf32> to vector<16x128xf32>
    %16 = arith.addf %12, %15 : vector<16x128xf32>
    %17 = tpu.iota {dimensions = array<i32: 1>} : vector<16x128xi32>
    %cst_9 = arith.constant dense<0xFF800000> : vector<16xf32>
    %18 = vector.multi_reduction <maximumf>, %16, %cst_9 [1] : vector<16x128xf32> to vector<16xf32>
    %19 = vector.shape_cast %18 : vector<16xf32> to vector<16x1xf32>
    %20 = vector.broadcast %19 : vector<16x1xf32> to vector<16x128xf32>
    %21 = arith.cmpf oeq, %16, %20 : vector<16x128xf32>
    %c128_i32 = arith.constant 128 : i32
    %22 = vector.broadcast %c128_i32 : i32 to vector<16x128xi32>
    %23 = arith.select %21, %17, %22 : vector<16x128xi1>, vector<16x128xi32>
    %cst_10 = arith.constant dense<2147483647> : vector<16xi32>
    %24 = vector.multi_reduction <minsi>, %23, %cst_10 [1] : vector<16x128xi32> to vector<16xi32>
    %25 = vector.shape_cast %24 : vector<16xi32> to vector<16x1xi32>
    %c0_11 = arith.constant 0 : index
    %c0_12 = arith.constant 0 : index
    %c0_13 = arith.constant 0 : index
    %26 = vector.load %arg3[%c0_11, %c0_12, %c0_13] : memref<2x16x128xf32, #tpu.memory_space<vmem>>, vector<1x16x128xf32>
    %27 = vector.shape_cast %26 : vector<1x16x128xf32> to vector<16x128xf32>
    %28 = vector.shape_cast %16 : vector<16x128xf32> to vector<1x16x128xf32>
    tpu.vector_store %arg3[%c0_11, %c0_12, %c0_13], %28 {strides = array<i32>} : memref<2x16x128xf32, #tpu.memory_space<vmem>>, vector<1x16x128xf32>,
    %29 = vector.broadcast %25 : vector<16x1xi32> to vector<16x128xi32>
    %30 = arith.cmpi eq, %17, %29 : vector<16x128xi32>
    %31 = arith.extui %30 : vector<16x128xi1> to vector<16x128xi32>
    %32 = arith.sitofp %31 : vector<16x128xi32> to vector<16x128xf32>
    %c1 = arith.constant 1 : index
    %c0_14 = arith.constant 0 : index
    %c0_15 = arith.constant 0 : index
    %33 = vector.load %arg3[%c1, %c0_14, %c0_15] : memref<2x16x128xf32, #tpu.memory_space<vmem>>, vector<1x16x128xf32>
    %34 = vector.shape_cast %33 : vector<1x16x128xf32> to vector<16x128xf32>
    %35 = vector.shape_cast %32 : vector<16x128xf32> to vector<1x16x128xf32>
    tpu.vector_store %arg3[%c1, %c0_14, %c0_15], %35 {strides = array<i32>} : memref<2x16x128xf32, #tpu.memory_space<vmem>>, vector<1x16x128xf32>,
    return
  }
}

</mosaic_0001>

<bundles_post_ra>
// kernel: tpu_custom_call.1
= control target key start
LH: loop header
LB: loop body
LE: loop exit
PB: predicated region body
PF: predicated region fallthrough
CT: control target
= control target key end

     0   :  { %8 = vsyncpa [#allocation3], 0  ;;  %s2204_s0 = inlined_call_operand.hbm [shape: f32[16,1024], index: 0, kind: input, shape index: {}]   ;;  %s2205_s1 = inlined_call_operand.hbm [shape: bf16[1024,256], index: 1, kind: input, shape index: {}]   ;;  %s2206_s2 = inlined_call_operand.hbm [shape: bf16[144,256], index: 2, kind: input, shape index: {}]   ;;  %s2207_s3 = inlined_call_operand.hbm [shape: f32[2,16,128], index: 3, kind: output, shape index: {}]  }
   0x1   :  { %9 = vsyncpa [#allocation6], 0  ;;  %s28_s14 = sshll.u32 %s2205_s1, 4  ;;  %s29_s14 = int_to_ptr.hbm [resolvable:$true] %s28_s14 }
   0x2   :  { %10 = vsyncpa [#allocation4], 0  ;;  %s2118_s15 = smov [#allocation5]   ;;  %s15_s19 = sshll.u32 %s2204_s0, 4  ;;  %s16_s19 = int_to_ptr.hbm [resolvable:$true] %s15_s19 }
   0x3   :  { %s30_s16 = sshll.u32 %s2118_s15, 4  ;;  %s2119_s20 = smov 128   ;;  %s31_s16 = int_to_ptr.vmem [resolvable:$true] %s30_s16 }
   0x4   :  { %s2120_s21 = smov 8   ;;  %s2121_s22 = smov [#allocation2]  }
   0x5   :  { %36 = dma.hbm_to_vmem [thread:$0]  %s29_s14, 16384, %s31_s16, [#allocation6], %s2119_s20, %s2119_s20, %s2120_s21  }
   0x6   :  { %s17_s23 = sshll.u32 %s2121_s22, 4  ;;  %s2122_s1 = smov 1024   ;;  %s18_s23 = int_to_ptr.vmem [resolvable:$true] %s17_s23 }
   0x7   :  { %s2123_s24 = smov 64   ;;  %s41_s27 = sshll.u32 %s2206_s2, 4  ;;  %s42_s27 = int_to_ptr.hbm [resolvable:$true] %s41_s27 }
   0x8   :  { %23 = dma.hbm_to_vmem [thread:$0]  %s16_s19, 2048, %s18_s23, [#allocation3], %s2122_s1, %s2122_s1, %s2123_s24  }
   0x9   :  { %s2124_s28 = smov [#allocation7]  }
   0xa   :  { %s43_s0 = sshll.u32 %s2124_s28, 4  ;;  %s44_s0 = int_to_ptr.vmem [resolvable:$true] %s43_s0 }
   0xb   :  { %49 = dma.hbm_to_vmem [thread:$0]  %s42_s27, 2304, %s44_s0, [#allocation6], %s2119_s20, %s2119_s20, %s2120_s21  }
   0xc   :  { %2112 = dma.done.wait [#allocation3], 2048  }
   0xd   :  { %2113 = vsyncadd [#allocation3], 4294965248 }
   0xe   :  { %2114 = dma.done.wait [#allocation6], 18688  }
   0xf   :  { %2115 = vsyncadd [#allocation6], 4294948608  ;;  %v1343_v0 = vld [vmem:[#allocation5 + $0x70] sm:$0xf]  ;;  %v1878_v1 = vld [vmem:[#allocation5 + $0x74] sm:$0xf0] }
  0x10   :  { %v1407_v2 = vld [vmem:[#allocation5 + $0xf0] sm:$0xf]  ;;  %v1344_v3 = vor.u32 %v1878_v1, %v1343_v0  ;;  %v1894_v4 = vld [vmem:[#allocation5 + $0xf4] sm:$0xf0]  ;;  %v1335_v5 = vld [vmem:[#allocation5 + $0x60] sm:$0xf] }
  0x11   :  { %v1876_v6 = vld [vmem:[#allocation5 + $0x64] sm:$0xf0]  ;;  %v1408_v7 = vor.u32 %v1894_v4, %v1407_v2  ;;  %v1399_v8 = vld [vmem:[#allocation5 + $0xe0] sm:$0xf]  ;;  %v1327_v12 = vld [vmem:[#allocation5 + $0x50] sm:$0xf] }
  0x12   :  { %v1892_v9 = vld [vmem:[#allocation5 + $0xe4] sm:$0xf0]  ;;  %859 = vmatpush.bf16.msra.mxu2 %v1344_v3  ;;  %v1336_v10 = vor.u32 %v1876_v6, %v1335_v5  ;;  %v1874_v13 = vld [vmem:[#allocation5 + $0x54] sm:$0xf0]  ;;  %v1391_v14 = vld [vmem:[#allocation5 + $0xd0] sm:$0xf] }
  0x13   :  { %873 = vmatpush.bf16.msra.mxu3 %v1408_v7  ;;  %v1400_v11 = vor.u32 %v1892_v9, %v1399_v8  ;;  %v1890_v15 = vld [vmem:[#allocation5 + $0xd4] sm:$0xf0]  ;;  %v1328_v16 = vor.u32 %v1874_v13, %v1327_v12  ;;  %v1319_v18 = vld [vmem:[#allocation5 + $0x40] sm:$0xf]  ;;  %v1872_v19 = vld [vmem:[#allocation5 + $0x44] sm:$0xf0] }
  0x14   :  { %v1392_v17 = vor.u32 %v1890_v15, %v1391_v14  ;;  %v1383_v20 = vld [vmem:[#allocation5 + $0xc0] sm:$0xf]  ;;  %v1888_v21 = vld [vmem:[#allocation5 + $0xc4] sm:$0xf0]  ;;  %v1320_v22 = vor.u32 %v1872_v19, %v1319_v18  ;;  %v1311_v24 = vld [vmem:[#allocation5 + $0x30] sm:$0xf] }
  0x15   :  { %v1384_v23 = vor.u32 %v1888_v21, %v1383_v20  ;;  %v1870_v25 = vld [vmem:[#allocation5 + $0x34] sm:$0xf0]  ;;  %v1375_v26 = vld [vmem:[#allocation5 + $0xb0] sm:$0xf]  ;;  %v1303_v30 = vld [vmem:[#allocation5 + $0x20] sm:$0xf] }
  0x16   :  { %860 = vmatpush.bf16.msra.mxu2 %v1336_v10  ;;  %v1886_v27 = vld [vmem:[#allocation5 + $0xb4] sm:$0xf0]  ;;  %v1599_v28 = vld [vmem:[#allocation5 + $0x270] sm:$0xf]  ;;  %v1312_v29 = vor.u32 %v1870_v25, %v1311_v24  ;;  %v1868_v31 = vld [vmem:[#allocation5 + $0x24] sm:$0xf0] }
  0x17   :  { %874 = vmatpush.bf16.msra.mxu3 %v1400_v11  ;;  %v1942_v32 = vld [vmem:[#allocation5 + $0x274] sm:$0xf0]  ;;  %v1376_v33 = vor.u32 %v1886_v27, %v1375_v26  ;;  %v1367_v34 = vld [vmem:[#allocation5 + $0xa0] sm:$0xf]  ;;  %v1884_v35 = vld [vmem:[#allocation5 + $0xa4] sm:$0xf0]  ;;  %v1304_v43 = vor.u32 %v1868_v31, %v1303_v30 }
  0x18   :  { %v1600_v36 = vor.u32 %v1942_v32, %v1599_v28  ;;  %v1663_v37 = vld [vmem:[#allocation5 + $0x2f0] sm:$0xf]  ;;  %v1958_v38 = vld [vmem:[#allocation5 + $0x2f4] sm:$0xf0]  ;;  %v1591_v39 = vld [vmem:[#allocation5 + $0x260] sm:$0xf]  ;;  %v1368_v46 = vor.u32 %v1884_v35, %v1367_v34 }
  0x19   :  { %v1940_v40 = vld [vmem:[#allocation5 + $0x264] sm:$0xf0]  ;;  %v1664_v41 = vor.u32 %v1958_v38, %v1663_v37  ;;  %v1295_v44 = vld [vmem:[#allocation5 + $0x10] sm:$0xf]  ;;  %v1866_v45 = vld [vmem:[#allocation5 + $0x14] sm:$0xf0] }
  0x1a   :  { %861 = vmatpush.bf16.msra.mxu2 %v1328_v16  ;;  %915 = vmatpush.bf16.msra.mxu0 %v1600_v36  ;;  %v1592_v42 = vor.u32 %v1940_v40, %v1591_v39  ;;  %v1359_v47 = vld [vmem:[#allocation5 + $0x90] sm:$0xf]  ;;  %v1655_v48 = vld [vmem:[#allocation5 + $0x2e0] sm:$0xf]  ;;  %v1956_v49 = vld [vmem:[#allocation5 + $0x2e4] sm:$0xf0]  ;;  %v1296_v57 = vor.u32 %v1866_v45, %v1295_v44 }
  0x1b   :  { %875 = vmatpush.bf16.msra.mxu3 %v1392_v17  ;;  %929 = vmatpush.bf16.msra.mxu1 %v1664_v41  ;;  %v1882_v50 = vld [vmem:[#allocation5 + $0x94] sm:$0xf0]  ;;  %v1656_v51 = vor.u32 %v1956_v49, %v1655_v48  ;;  %v1583_v52 = vld [vmem:[#allocation5 + $0x250] sm:$0xf]  ;;  %v1287_v54 = vld [vmem:[#allocation5] sm:$0xf] }
  0x1c   :  { %v1938_v53 = vld [vmem:[#allocation5 + $0x254] sm:$0xf0]  ;;  %v1864_v55 = vld [vmem:[#allocation5 + $0x4] sm:$0xf0]  ;;  %v1351_v58 = vld [vmem:[#allocation5 + $0x80] sm:$0xf]  ;;  %v1360_v62 = vor.u32 %v1882_v50, %v1359_v47 }
  0x1d   :  { %v1584_v56 = vor.u32 %v1938_v53, %v1583_v52  ;;  %v1880_v59 = vld [vmem:[#allocation5 + $0x84] sm:$0xf0]  ;;  %v1647_v60 = vld [vmem:[#allocation5 + $0x2d0] sm:$0xf]  ;;  %v1954_v61 = vld [vmem:[#allocation5 + $0x2d4] sm:$0xf0]  ;;  %v1288_v10 = vor.u32 %v1864_v55, %v1287_v54 }
  0x1e   :  { %862 = vmatpush.bf16.msra.mxu2 %v1320_v22  ;;  %916 = vmatpush.bf16.msra.mxu0 %v1592_v42  ;;  %v1471_v63 = vld [vmem:[#allocation5 + $0x170] sm:$0xf]  ;;  %v1648_v0 = vor.u32 %v1954_v61, %v1647_v60  ;;  %v1575_v1 = vld [vmem:[#allocation5 + $0x240] sm:$0xf]  ;;  %v1936_v2 = vld [vmem:[#allocation5 + $0x244] sm:$0xf0]  ;;  %v1352_v14 = vor.u32 %v1880_v59, %v1351_v58 }
  0x1f   :  { %876 = vmatpush.bf16.msra.mxu3 %v1384_v23  ;;  %930 = vmatpush.bf16.msra.mxu1 %v1656_v51  ;;  %v1910_v3 = vld [vmem:[#allocation5 + $0x174] sm:$0xf0]  ;;  %v1535_v4 = vld [vmem:[#allocation5 + $0x1f0] sm:$0xf]  ;;  %v62_v6 = vld [vmem:[#allocation2] sm:$0xff]  ;;  %v1576_v7 = vor.u32 %v1936_v2, %v1575_v1  ;;  %s2126_s2 = smov [#allocation8]  }
  0x20   :  { %v1926_v5 = vld [vmem:[#allocation5 + $0x1f4] sm:$0xf0]  ;;  %v1639_v8 = vld [vmem:[#allocation5 + $0x2c0] sm:$0xf]  ;;  %v1952_v9 = vld [vmem:[#allocation5 + $0x2c4] sm:$0xf0]  ;;  %v1472_v15 = vor.u32 %v1910_v3, %v1471_v63 }
  0x21   :  { %v70_v11 = vld [vmem:[#allocation2 + $0x40] sm:$0xff]  ;;  %v1567_v12 = vld [vmem:[#allocation5 + $0x230] sm:$0xf]  ;;  %v1934_v13 = vld [vmem:[#allocation5 + $0x234] sm:$0xf0]  ;;  %v1536_v18 = vor.u32 %v1926_v5, %v1535_v4  ;;  %v1640_v22 = vor.u32 %v1952_v9, %v1639_v8  ;;  %s1269_s29 = sshll.u32 %s2126_s2, 4  ;;  %s1270_s29 = int_to_ptr.vmem [resolvable:$true] %s1269_s29 }
  0x22   :  { %863 = vmatpush.bf16.msra.mxu2 %v1312_v29  ;;  %917 = vmatpush.bf16.msra.mxu0 %v1584_v56  ;;  %v63_v16 = vld [vmem:[#allocation2 + $0x8] sm:$0xff]  ;;  %v1463_v19 = vld [vmem:[#allocation5 + $0x160] sm:$0xf]  ;;  %v2162_v24 = vpack.c.bf16 %v70_v11, %v62_v6  ;;  %v1568_v25 = vor.u32 %v1934_v13, %v1567_v12  ;;  %v1631_v26 = vld [vmem:[#allocation5 + $0x2b0] sm:$0xf]  ;;  %s1271_s5 = sshll.u32 %s2207_s3, 4  ;;  %s1272_s5 = int_to_ptr.hbm [resolvable:$true] %s1271_s5 }
  0x23   :  { %877 = vmatpush.bf16.msra.mxu3 %v1376_v33  ;;  %v71_v17 = vld [vmem:[#allocation2 + $0x48] sm:$0xff]  ;;  %931 = vmatpush.bf16.msra.mxu1 %v1648_v0  ;;  %v1527_v21 = vld [vmem:[#allocation5 + $0x1e0] sm:$0xf]  ;;  %v1950_v27 = vld [vmem:[#allocation5 + $0x2b4] sm:$0xf0] }
  0x24   :  { %v1908_v20 = vld [vmem:[#allocation5 + $0x164] sm:$0xf0]  ;;  %v2164_v28 = vpack.c.bf16 %v71_v17, %v63_v16  ;;  %v1559_v29 = vld [vmem:[#allocation5 + $0x220] sm:$0xf]  ;;  %v1455_v33 = vld [vmem:[#allocation5 + $0x150] sm:$0xf]  ;;  %v1632_v36 = vor.u32 %v1950_v27, %v1631_v26 }
  0x25   :  { %v1924_v23 = vld [vmem:[#allocation5 + $0x1e4] sm:$0xf0]  ;;  %v1464_v31 = vor.u32 %v1908_v20, %v1463_v19  ;;  %v1906_v34 = vld [vmem:[#allocation5 + $0x154] sm:$0xf0]  ;;  %v1519_v35 = vld [vmem:[#allocation5 + $0x1d0] sm:$0xf] }
  0x26   :  { %864 = vmatpush.bf16.msra.mxu2 %v1304_v43  ;;  %918 = vmatpush.bf16.msra.mxu0 %v1576_v7  ;;  %v1932_v30 = vld [vmem:[#allocation5 + $0x224] sm:$0xf0]  ;;  %v1528_v32 = vor.u32 %v1924_v23, %v1527_v21  ;;  %v1922_v37 = vld [vmem:[#allocation5 + $0x1d4] sm:$0xf0]  ;;  %v1623_v39 = vld [vmem:[#allocation5 + $0x2a0] sm:$0xf]  ;;  %v1456_v43 = vor.u32 %v1906_v34, %v1455_v33 }
  0x27   :  { %878 = vmatpush.bf16.msra.mxu3 %v1368_v46  ;;  %932 = vmatpush.bf16.msra.mxu1 %v1640_v22  ;;  %v1560_v38 = vor.u32 %v1932_v30, %v1559_v29  ;;  %v1948_v40 = vld [vmem:[#allocation5 + $0x2a4] sm:$0xf0]  ;;  %v1551_v41 = vld [vmem:[#allocation5 + $0x210] sm:$0xf]  ;;  %v1930_v42 = vld [vmem:[#allocation5 + $0x214] sm:$0xf0]  ;;  %v1520_v44 = vor.u32 %v1922_v37, %v1519_v35 }
  0x28   :  { %v1447_v45 = vld [vmem:[#allocation5 + $0x140] sm:$0xf]  ;;  %v1904_v46 = vld [vmem:[#allocation5 + $0x144] sm:$0xf0]  ;;  %v1624_v48 = vor.u32 %v1948_v40, %v1623_v39  ;;  %v1552_v50 = vor.u32 %v1930_v42, %v1551_v41  ;;  %v1615_v51 = vld [vmem:[#allocation5 + $0x290] sm:$0xf] }
  0x29   :  { %v1511_v47 = vld [vmem:[#allocation5 + $0x1c0] sm:$0xf]  ;;  %v1920_v49 = vld [vmem:[#allocation5 + $0x1c4] sm:$0xf0]  ;;  %v1946_v52 = vld [vmem:[#allocation5 + $0x294] sm:$0xf0]  ;;  %v1448_v55 = vor.u32 %v1904_v46, %v1447_v45 }
  0x2a   :  { %865 = vmatpush.bf16.msra.mxu2 %v1296_v57  ;;  %919 = vmatpush.bf16.msra.mxu0 %v1568_v25  ;;  %v1543_v53 = vld [vmem:[#allocation5 + $0x200] sm:$0xf]  ;;  %v1928_v54 = vld [vmem:[#allocation5 + $0x204] sm:$0xf0]  ;;  %v1439_v56 = vld [vmem:[#allocation5 + $0x130] sm:$0xf]  ;;  %v1512_v58 = vor.u32 %v1920_v49, %v1511_v47  ;;  %v1616_v61 = vor.u32 %v1946_v52, %v1615_v51 }
  0x2b   :  { %879 = vmatpush.bf16.msra.mxu3 %v1360_v62  ;;  %933 = vmatpush.bf16.msra.mxu1 %v1632_v36  ;;  %v1902_v57 = vld [vmem:[#allocation5 + $0x134] sm:$0xf0]  ;;  %v1503_v59 = vld [vmem:[#allocation5 + $0x1b0] sm:$0xf]  ;;  %v1607_v62 = vld [vmem:[#allocation5 + $0x280] sm:$0xf]  ;;  %v1544_v63 = vor.u32 %v1928_v54, %v1543_v53 }
  0x2c   :  { %v1918_v60 = vld [vmem:[#allocation5 + $0x1b4] sm:$0xf0]  ;;  %v1944_v0 = vld [vmem:[#allocation5 + $0x284] sm:$0xf0]  ;;  %v1877_v1 = vld [vmem:[#allocation5 + $0x74] sm:$0xf]  ;;  %v1440_v7 = vor.u32 %v1902_v57, %v1439_v56 }
  0x2d   :  { %v1345_v2 = vld [vmem:[#allocation5 + $0x78] sm:$0xf0]  ;;  %v1431_v3 = vld [vmem:[#allocation5 + $0x120] sm:$0xf]  ;;  %v1900_v8 = vld [vmem:[#allocation5 + $0x124] sm:$0xf0]  ;;  %v1504_v11 = vor.u32 %v1918_v60, %v1503_v59  ;;  %v1608_v13 = vor.u32 %v1944_v0, %v1607_v62 }
  0x2e   :  { %866 = vmatpush.bf16.msra.mxu2 %v1288_v10  ;;  %920 = vmatpush.bf16.msra.mxu0 %v1560_v38  ;;  %v66_v4 = vld [vmem:[#allocation2 + $0x20] sm:$0xff]  ;;  %v1348_v6 = vor.u32 %v1877_v1, %v1345_v2  ;;  %v1893_v9 = vld [vmem:[#allocation5 + $0xf4] sm:$0xf]  ;;  %v1409_v10 = vld [vmem:[#allocation5 + $0xf8] sm:$0xf0]  ;;  %v1432_v22 = vor.u32 %v1900_v8, %v1431_v3 }
  0x2f   :  { %880 = vmatpush.bf16.msra.mxu3 %v1352_v14  ;;  %934 = vmatpush.bf16.msra.mxu1 %v1624_v48  ;;  %v74_v5 = vld [vmem:[#allocation2 + $0x60] sm:$0xff]  ;;  %v67_v14 = vld [vmem:[#allocation2 + $0x28] sm:$0xff]  ;;  %v1423_v29 = vld [vmem:[#allocation5 + $0x110] sm:$0xf] }
  0x30   :  { %v1495_v12 = vld [vmem:[#allocation5 + $0x1a0] sm:$0xf]  ;;  %v1916_v16 = vld [vmem:[#allocation5 + $0x1a4] sm:$0xf0]  ;;  %v2168_v17 = vpack.c.bf16 %v74_v5, %v66_v4  ;;  %v1875_v19 = vld [vmem:[#allocation5 + $0x64] sm:$0xf] }
  0x31   :  { %867 = vmatmul.bf16.vlgmr.msra.gmra.mxu2 %v2162_v24  ;;  %v1337_v20 = vld [vmem:[#allocation5 + $0x68] sm:$0xf0]  ;;  %v1891_v25 = vld [vmem:[#allocation5 + $0xe4] sm:$0xf]  ;;  %v1496_v27 = vor.u32 %v1916_v16, %v1495_v12  ;;  %v1898_v30 = vld [vmem:[#allocation5 + $0x114] sm:$0xf0] }
  0x32   :  { %887 = vmatpush.bf16.msrb.mxu2 %v1472_v15  ;;  %881 = vmatmul.bf16.vlgmr.msra.gmra.mxu3 %v2164_v28  ;;  %v75_v15 = vld [vmem:[#allocation2 + $0x68] sm:$0xff]  ;;  %v1340_v21 = vor.u32 %v1875_v19, %v1337_v20  ;;  %v1873_v34 = vld [vmem:[#allocation5 + $0x54] sm:$0xf]  ;;  %v1329_v35 = vld [vmem:[#allocation5 + $0x58] sm:$0xf0]  ;;  %v1424_v38 = vor.u32 %v1898_v30, %v1423_v29 }
  0x33   :  { %901 = vmatpush.bf16.msrb.mxu3 %v1536_v18  ;;  %921 = vmatpush.bf16.msra.mxu0 %v1552_v50  ;;  %v1412_v18 = vor.u32 %v1893_v9, %v1409_v10  ;;  %v2170_v23 = vpack.c.bf16 %v75_v15, %v67_v14  ;;  %v1401_v26 = vld [vmem:[#allocation5 + $0xe8] sm:$0xf0]  ;;  %v1415_v36 = vld [vmem:[#allocation5 + $0x100] sm:$0xf]  ;;  %v1332_v37 = vor.u32 %v1873_v34, %v1329_v35  ;;  %v1896_v39 = vld [vmem:[#allocation5 + $0x104] sm:$0xf0] }
  0x34   :  { %935 = vmatpush.bf16.msra.mxu1 %v1616_v61  ;;  %v1404_v33 = vor.u32 %v1891_v25, %v1401_v26  ;;  %v1889_v40 = vld [vmem:[#allocation5 + $0xd4] sm:$0xf]  ;;  %v1393_v41 = vld [vmem:[#allocation5 + $0xd8] sm:$0xf0]  ;;  %v1727_v45 = vld [vmem:[#allocation5 + $0x370] sm:$0xf]  ;;  %v1416_v54 = vor.u32 %v1896_v39, %v1415_v36 }
  0x35   :  { %v1974_v46 = vld [vmem:[#allocation5 + $0x374] sm:$0xf0]  ;;  %v1396_v47 = vor.u32 %v1889_v40, %v1393_v41  ;;  %v1871_v48 = vld [vmem:[#allocation5 + $0x44] sm:$0xf]  ;;  %v1321_v49 = vld [vmem:[#allocation5 + $0x48] sm:$0xf0] }
  0x36   :  { %888 = vmatpush.bf16.msrb.mxu2 %v1464_v31  ;;  %v1487_v31 = vld [vmem:[#allocation5 + $0x190] sm:$0xf]  ;;  %v1990_v51 = vld [vmem:[#allocation5 + $0x3f4] sm:$0xf0]  ;;  %v1324_v53 = vor.u32 %v1871_v48, %v1321_v49  ;;  %v1887_v56 = vld [vmem:[#allocation5 + $0xc4] sm:$0xf]  ;;  %v1728_v59 = vor.u32 %v1974_v46, %v1727_v45 }
  0x37   :  { %902 = vmatpush.bf16.msrb.mxu3 %v1528_v32  ;;  %922 = vmatpush.bf16.msra.mxu0 %v1544_v63  ;;  %v1914_v32 = vld [vmem:[#allocation5 + $0x194] sm:$0xf0]  ;;  %v1791_v50 = vld [vmem:[#allocation5 + $0x3f0] sm:$0xf]  ;;  %v1385_v57 = vld [vmem:[#allocation5 + $0xc8] sm:$0xf0] }
  0x38   :  { %936 = vmatpush.bf16.msra.mxu1 %v1608_v13  ;;  %v1488_v42 = vor.u32 %v1914_v32, %v1487_v31  ;;  %v64_v52 = vld [vmem:[#allocation2 + $0x10] sm:$0xff]  ;;  %v65_v60 = vld [vmem:[#allocation2 + $0x18] sm:$0xff]  ;;  %v1792_v62 = vor.u32 %v1990_v51, %v1791_v50  ;;  %v1719_v63 = vld [vmem:[#allocation5 + $0x360] sm:$0xf]  ;;  %v1388_v1 = vor.u32 %v1887_v56, %v1385_v57 }
  0x39   :  { %v73_v61 = vld [vmem:[#allocation2 + $0x58] sm:$0xff]  ;;  %v1972_v0 = vld [vmem:[#allocation5 + $0x364] sm:$0xf0]  ;;  %v1869_v2 = vld [vmem:[#allocation5 + $0x34] sm:$0xf] }
  0x3a   :  { %889 = vmatpush.bf16.msrb.mxu2 %v1456_v43  ;;  %923 = vmatmul.bf16.vlgmr.msra.gmra.mxu0 %v2168_v17  ;;  %v1479_v43 = vld [vmem:[#allocation5 + $0x180] sm:$0xf]  ;;  %v1988_v5 = vld [vmem:[#allocation5 + $0x3e4] sm:$0xf0]  ;;  %v1885_v9 = vld [vmem:[#allocation5 + $0xb4] sm:$0xf]  ;;  %v1720_v10 = vor.u32 %v1972_v0, %v1719_v63 }
  0x3b   :  { %903 = vmatpush.bf16.msrb.mxu3 %v1520_v44  ;;  %971 = vmatpush.bf16.msrb.mxu0 %v1348_v6  ;;  %v1912_v44 = vld [vmem:[#allocation5 + $0x184] sm:$0xf0]  ;;  %v1783_v4 = vld [vmem:[#allocation5 + $0x3e0] sm:$0xf]  ;;  %v1313_v6 = vld [vmem:[#allocation5 + $0x38] sm:$0xf0] }
  0x3c   :  { %985 = vmatpush.bf16.msrb.mxu1 %v1412_v18  ;;  %v1316_v8 = vor.u32 %v1869_v2, %v1313_v6  ;;  %v1970_v12 = vld [vmem:[#allocation5 + $0x354] sm:$0xf0]  ;;  %v1377_v13 = vld [vmem:[#allocation5 + $0xb8] sm:$0xf0]  ;;  %v1784_v14 = vor.u32 %v1988_v5, %v1783_v4  ;;  %v1775_v15 = vld [vmem:[#allocation5 + $0x3d0] sm:$0xf] }
  0x3d   :  { %937 = vmatmul.bf16.vlgmr.msra.gmra.mxu1 %v2170_v23  ;;  %v1986_v16 = vld [vmem:[#allocation5 + $0x3d4] sm:$0xf0]  ;;  %v1380_v18 = vor.u32 %v1885_v9, %v1377_v13  ;;  %v1867_v19 = vld [vmem:[#allocation5 + $0x24] sm:$0xf]  ;;  %v1305_v20 = vld [vmem:[#allocation5 + $0x28] sm:$0xf0] }
  0x3e   :  { %890 = vmatpush.bf16.msrb.mxu2 %v1448_v55  ;;  %v72_v55 = vld [vmem:[#allocation2 + $0x50] sm:$0xff]  ;;  %v1308_v25 = vor.u32 %v1867_v19, %v1305_v20  ;;  %v1968_v29 = vld [vmem:[#allocation5 + $0x344] sm:$0xf0]  ;;  %v1776_v30 = vor.u32 %v1986_v16, %v1775_v15  ;;  %v1767_v31 = vld [vmem:[#allocation5 + $0x3c0] sm:$0xf] }
  0x3f   :  { %904 = vmatpush.bf16.msrb.mxu3 %v1512_v58  ;;  %972 = vmatpush.bf16.msrb.mxu0 %v1340_v21  ;;  %v1480_v58 = vor.u32 %v1912_v44, %v1479_v43  ;;  %v2174_v3 = vpack.c.bf16 %v72_v55, %v64_v52  ;;  %v1883_v21 = vld [vmem:[#allocation5 + $0xa4] sm:$0xf]  ;;  %v1297_v34 = vld [vmem:[#allocation5 + $0x18] sm:$0xf0]  ;;  %v1984_v35 = vld [vmem:[#allocation5 + $0x3c4] sm:$0xf0] }
  0x40   :  { %986 = vmatpush.bf16.msrb.mxu1 %v1404_v33  ;;  %v1865_v33 = vld [vmem:[#allocation5 + $0x14] sm:$0xf]  ;;  %v1695_v40 = vld [vmem:[#allocation5 + $0x330] sm:$0xf]  ;;  %v1966_v41 = vld [vmem:[#allocation5 + $0x334] sm:$0xf0]  ;;  %v1768_v43 = vor.u32 %v1984_v35, %v1767_v31 }
  0x41   :  { %v1300_v36 = vor.u32 %v1865_v33, %v1297_v34  ;;  %v1982_v44 = vld [vmem:[#allocation5 + $0x3b4] sm:$0xf0]  ;;  %v1863_v46 = vld [vmem:[#allocation5 + $0x4] sm:$0xf]  ;;  %v1941_v49 = vld [vmem:[#allocation5 + $0x274] sm:$0xf] }
  0x42   :  { %891 = vmatpush.bf16.msrb.mxu2 %v1440_v7  ;;  %v2176_v7 = vpack.c.bf16 %v73_v61, %v65_v60  ;;  %v1601_v50 = vld [vmem:[#allocation5 + $0x278] sm:$0xf0]  ;;  %v1879_v51 = vld [vmem:[#allocation5 + $0x84] sm:$0xf]  ;;  %v1687_v55 = vld [vmem:[#allocation5 + $0x320] sm:$0xf] }
  0x43   :  { %905 = vmatpush.bf16.msrb.mxu3 %v1504_v11  ;;  %973 = vmatpush.bf16.msrb.mxu0 %v1332_v37  ;;  %v1711_v11 = vld [vmem:[#allocation5 + $0x350] sm:$0xf]  ;;  %v1881_v37 = vld [vmem:[#allocation5 + $0x94] sm:$0xf]  ;;  %v1604_v52 = vor.u32 %v1941_v49, %v1601_v50  ;;  %v1665_v61 = vld [vmem:[#allocation5 + $0x2f8] sm:$0xf0] }
  0x44   :  { %987 = vmatpush.bf16.msrb.mxu1 %v1396_v47  ;;  %v1712_v26 = vor.u32 %v1970_v12, %v1711_v11  ;;  %v1289_v47 = vld [vmem:[#allocation5 + $0x8] sm:$0xf0]  ;;  %v1957_v56 = vld [vmem:[#allocation5 + $0x2f4] sm:$0xf]  ;;  %v1939_v0 = vld [vmem:[#allocation5 + $0x264] sm:$0xf] }
  0x45   :  { %v1292_v48 = vor.u32 %v1863_v46, %v1289_v47  ;;  %v1668_v63 = vor.u32 %v1957_v56, %v1665_v61  ;;  %v1955_v5 = vld [vmem:[#allocation5 + $0x2e4] sm:$0xf]  ;;  %v1657_v6 = vld [vmem:[#allocation5 + $0x2e8] sm:$0xf0]  ;;  %v1679_v9 = vld [vmem:[#allocation5 + $0x310] sm:$0xf] }
  0x46   :  { %892 = vmatpush.bf16.msrb.mxu2 %v1432_v22  ;;  %v1369_v22 = vld [vmem:[#allocation5 + $0xa8] sm:$0xf0]  ;;  %v1743_v11 = vld [vmem:[#allocation5 + $0x390] sm:$0xf]  ;;  %v1978_v12 = vld [vmem:[#allocation5 + $0x394] sm:$0xf0]  ;;  %v1660_v13 = vor.u32 %v1955_v5, %v1657_v6 }
  0x47   :  { %906 = vmatpush.bf16.msrb.mxu3 %v1496_v27  ;;  %974 = vmatpush.bf16.msrb.mxu0 %v1324_v53  ;;  %v1703_v27 = vld [vmem:[#allocation5 + $0x340] sm:$0xf]  ;;  %v1372_v32 = vor.u32 %v1883_v21, %v1369_v22  ;;  %v1353_v53 = vld [vmem:[#allocation5 + $0x88] sm:$0xf0]  ;;  %v1585_v15 = vld [vmem:[#allocation5 + $0x258] sm:$0xf0] }
  0x48   :  { %988 = vmatpush.bf16.msrb.mxu1 %v1388_v1  ;;  %v1704_v39 = vor.u32 %v1968_v29, %v1703_v27  ;;  %v1356_v60 = vor.u32 %v1879_v51, %v1353_v53  ;;  %v1593_v1 = vld [vmem:[#allocation5 + $0x268] sm:$0xf0]  ;;  %v1671_v16 = vld [vmem:[#allocation5 + $0x300] sm:$0xf]  ;;  %v1953_v22 = vld [vmem:[#allocation5 + $0x2d4] sm:$0xf] }
  0x49   :  { %v1596_v2 = vor.u32 %v1939_v0, %v1593_v1  ;;  %v1735_v21 = vld [vmem:[#allocation5 + $0x380] sm:$0xf]  ;;  %v1976_v27 = vld [vmem:[#allocation5 + $0x384] sm:$0xf0]  ;;  %v1909_v29 = vld [vmem:[#allocation5 + $0x174] sm:$0xf] }
  0x4a   :  { %893 = vmatpush.bf16.msrb.mxu2 %v1424_v38  ;;  %v1361_v38 = vld [vmem:[#allocation5 + $0x98] sm:$0xf0]  ;;  %v1925_v31 = vld [vmem:[#allocation5 + $0x1f4] sm:$0xf]  ;;  %v1577_v33 = vld [vmem:[#allocation5 + $0x248] sm:$0xf0] }
  0x4b   :  { %907 = vmatpush.bf16.msrb.mxu3 %v1488_v42  ;;  %975 = vmatpush.bf16.msrb.mxu0 %v1316_v8  ;;  %v1759_v42 = vld [vmem:[#allocation5 + $0x3b0] sm:$0xf]  ;;  %v1364_v45 = vor.u32 %v1881_v37, %v1361_v38  ;;  %v1537_v34 = vld [vmem:[#allocation5 + $0x1f8] sm:$0xf0]  ;;  %v1923_v47 = vld [vmem:[#allocation5 + $0x1e4] sm:$0xf] }
  0x4c   :  { %989 = vmatpush.bf16.msrb.mxu1 %v1380_v18  ;;  %v1760_v57 = vor.u32 %v1982_v44, %v1759_v42  ;;  %v1960_v18 = vld [vmem:[#allocation5 + $0x304] sm:$0xf0]  ;;  %v68_v35 = vld [vmem:[#allocation2 + $0x30] sm:$0xff]  ;;  %v1907_v44 = vld [vmem:[#allocation5 + $0x164] sm:$0xf]  ;;  %v1540_v46 = vor.u32 %v1925_v31, %v1537_v34 }
  0x4d   :  { %v1672_v38 = vor.u32 %v1960_v18, %v1671_v16  ;;  %v1933_v49 = vld [vmem:[#allocation5 + $0x234] sm:$0xf]  ;;  %v1569_v50 = vld [vmem:[#allocation5 + $0x238] sm:$0xf0]  ;;  %v1561_v0 = vld [vmem:[#allocation5 + $0x228] sm:$0xf0] }
  0x4e   :  { %894 = vmatpush.bf16.msrb.mxu2 %v1416_v54  ;;  %v1696_v54 = vor.u32 %v1966_v41, %v1695_v40  ;;  %v1951_v40 = vld [vmem:[#allocation5 + $0x2c4] sm:$0xf]  ;;  %v1736_v41 = vor.u32 %v1976_v27, %v1735_v21  ;;  %v1572_v53 = vor.u32 %v1933_v49, %v1569_v50  ;;  %v1921_v61 = vld [vmem:[#allocation5 + $0x1d4] sm:$0xf]  ;;  %v1521_v1 = vld [vmem:[#allocation5 + $0x1d8] sm:$0xf0] }
  0x4f   :  { %908 = vmatpush.bf16.msrb.mxu3 %v1480_v58  ;;  %976 = vmatpush.bf16.msrb.mxu0 %v1308_v25  ;;  %v1964_v58 = vld [vmem:[#allocation5 + $0x324] sm:$0xf0]  ;;  %v1649_v25 = vld [vmem:[#allocation5 + $0x2d8] sm:$0xf0]  ;;  %v1625_v5 = vld [vmem:[#allocation5 + $0x2a8] sm:$0xf0] }
  0x50   :  { %990 = vmatpush.bf16.msrb.mxu1 %v1372_v32  ;;  %v1688_v4 = vor.u32 %v1964_v58, %v1687_v55  ;;  %v1652_v32 = vor.u32 %v1953_v22, %v1649_v25  ;;  %v1633_v55 = vld [vmem:[#allocation5 + $0x2b8] sm:$0xf0]  ;;  %v1905_v58 = vld [vmem:[#allocation5 + $0x154] sm:$0xf]  ;;  %v1417_v49 = vld [vmem:[#allocation5 + $0x108] sm:$0xf0] }
  0x51   :  { %895 = vmatmul.bf16.vlgmr.msrb.gmra.mxu2 %v2174_v3  ;;  %v1945_v18 = vld [vmem:[#allocation5 + $0x294] sm:$0xf]  ;;  %v1441_v22 = vld [vmem:[#allocation5 + $0x138] sm:$0xf0]  ;;  %v1911_v50 = vld [vmem:[#allocation5 + $0x184] sm:$0xf] }
  0x52   :  { %943 = vmatpush.bf16.msra.mxu2 %v1728_v59  ;;  %909 = vmatmul.bf16.vlgmr.msrb.gmra.mxu3 %v2176_v7  ;;  %v1751_v59 = vld [vmem:[#allocation5 + $0x3a0] sm:$0xf]  ;;  %v1901_v21 = vld [vmem:[#allocation5 + $0x134] sm:$0xf]  ;;  %v1505_v31 = vld [vmem:[#allocation5 + $0x1b8] sm:$0xf0] }
  0x53   :  { %957 = vmatpush.bf16.msra.mxu3 %v1792_v62  ;;  %977 = vmatpush.bf16.msrb.mxu0 %v1300_v36  ;;  %v1980_v62 = vld [vmem:[#allocation5 + $0x3a4] sm:$0xf0]  ;;  %v76_v36 = vld [vmem:[#allocation2 + $0x70] sm:$0xff]  ;;  %v1444_v34 = vor.u32 %v1901_v21, %v1441_v22  ;;  %v1697_v21 = vld [vmem:[#allocation5 + $0x338] sm:$0xf0] }
  0x54   :  { %991 = vmatpush.bf16.msrb.mxu1 %v1364_v45  ;;  %v1752_v8 = vor.u32 %v1980_v62, %v1751_v59  ;;  %v1465_v45 = vld [vmem:[#allocation5 + $0x168] sm:$0xf0]  ;;  %v2182_v51 = vpack.c.bf16 %v76_v36, %v68_v35  ;;  %v1457_v59 = vld [vmem:[#allocation5 + $0x158] sm:$0xf0]  ;;  %v1899_v36 = vld [vmem:[#allocation5 + $0x124] sm:$0xf] }
  0x55   :  { %v1460_v6 = vor.u32 %v1905_v58, %v1457_v59  ;;  %v1761_v22 = vld [vmem:[#allocation5 + $0x3b8] sm:$0xf0] }
  0x56   :  { %944 = vmatpush.bf16.msra.mxu2 %v1720_v10  ;;  %v1962_v10 = vld [vmem:[#allocation5 + $0x314] sm:$0xf0] }
  0x57   :  { %958 = vmatpush.bf16.msra.mxu3 %v1784_v14  ;;  %978 = vmatpush.bf16.msrb.mxu0 %v1292_v48  ;;  %v1937_v14 = vld [vmem:[#allocation5 + $0x254] sm:$0xf]  ;;  %v1680_v20 = vor.u32 %v1962_v10, %v1679_v9  ;;  %v1449_v9 = vld [vmem:[#allocation5 + $0x148] sm:$0xf0]  ;;  %v1524_v10 = vor.u32 %v1921_v61, %v1521_v1  ;;  %v1971_v61 = vld [vmem:[#allocation5 + $0x364] sm:$0xf] }
  0x58   :  { %992 = vmatpush.bf16.msrb.mxu1 %v1356_v60  ;;  %v1588_v19 = vor.u32 %v1937_v14, %v1585_v15  ;;  %v1553_v14 = vld [vmem:[#allocation5 + $0x218] sm:$0xf0]  ;;  %v1513_v15 = vld [vmem:[#allocation5 + $0x1c8] sm:$0xf0]  ;;  %v1855_v1 = vld [vmem:[#allocation7 + $0x70] sm:$0xf] }
  0x5a   :  { %945 = vmatpush.bf16.msra.mxu2 %v1712_v26  ;;  %979 = vmatmul.bf16.vlgmr.msrb.gmra.mxu0 %v2162_v24  ;;  %v1744_v26 = vor.u32 %v1978_v12, %v1743_v11  ;;  %v1935_v24 = vld [vmem:[#allocation5 + $0x244] sm:$0xf] }
  0x5b   :  { %959 = vmatpush.bf16.msra.mxu3 %v1776_v30  ;;  %1027 = vmatpush.bf16.msra.mxu0 %v1604_v52  ;;  %v1473_v30 = vld [vmem:[#allocation5 + $0x178] sm:$0xf0]  ;;  %v1580_v37 = vor.u32 %v1935_v24, %v1577_v33  ;;  %v1529_v52 = vld [vmem:[#allocation5 + $0x1e8] sm:$0xf0]  ;;  %v1919_v11 = vld [vmem:[#allocation5 + $0x1c4] sm:$0xf] }
  0x5c   :  { %1041 = vmatpush.bf16.msra.mxu1 %v1668_v63  ;;  %v1476_v42 = vor.u32 %v1909_v29, %v1473_v30  ;;  %v1532_v60 = vor.u32 %v1923_v47, %v1529_v52  ;;  %v1931_v63 = vld [vmem:[#allocation5 + $0x224] sm:$0xf]  ;;  %v1516_v25 = vor.u32 %v1919_v11, %v1513_v15  ;;  %v1545_v30 = vld [vmem:[#allocation5 + $0x208] sm:$0xf0] }
  0x5d   :  { %993 = vmatmul.bf16.vlgmr.msrb.gmra.mxu1 %v2164_v28  ;;  %v1641_v28 = vld [vmem:[#allocation5 + $0x2c8] sm:$0xf0]  ;;  %v1927_v29 = vld [vmem:[#allocation5 + $0x204] sm:$0xf] }
  0x5e   :  { %946 = vmatpush.bf16.msra.mxu2 %v1704_v39  ;;  %v69_v39 = vld [vmem:[#allocation2 + $0x38] sm:$0xff]  ;;  %v1644_v48 = vor.u32 %v1951_v40, %v1641_v28  ;;  %v1943_v24 = vld [vmem:[#allocation5 + $0x284] sm:$0xf]  ;;  %v1609_v33 = vld [vmem:[#allocation5 + $0x288] sm:$0xf0] }
  0x5f   :  { %960 = vmatpush.bf16.msra.mxu3 %v1768_v43  ;;  %1028 = vmatpush.bf16.msra.mxu0 %v1596_v2  ;;  %v77_v43 = vld [vmem:[#allocation2 + $0x78] sm:$0xff]  ;;  %v1564_v2 = vor.u32 %v1931_v63, %v1561_v0  ;;  %v1497_v40 = vld [vmem:[#allocation5 + $0x1a8] sm:$0xf0]  ;;  %v1987_v63 = vld [vmem:[#allocation5 + $0x3e4] sm:$0xf] }
  0x60   :  { %1042 = vmatpush.bf16.msra.mxu1 %v1660_v13  ;;  %v2184_v56 = vpack.c.bf16 %v77_v43, %v69_v39  ;;  %v1929_v13 = vld [vmem:[#allocation5 + $0x214] sm:$0xf]  ;;  %v1915_v39 = vld [vmem:[#allocation5 + $0x1a4] sm:$0xf]  ;;  %v1425_v43 = vld [vmem:[#allocation5 + $0x118] sm:$0xf0] }
  0x61   :  { %v1556_v16 = vor.u32 %v1929_v13, %v1553_v14  ;;  %v1481_v52 = vld [vmem:[#allocation5 + $0x188] sm:$0xf0]  ;;  %v1967_v13 = vld [vmem:[#allocation5 + $0x344] sm:$0xf] }
  0x62   :  { %947 = vmatpush.bf16.msra.mxu2 %v1696_v54  ;;  %v1949_v54 = vld [vmem:[#allocation5 + $0x2b4] sm:$0xf]  ;;  %v1484_v59 = vor.u32 %v1911_v50, %v1481_v52  ;;  %v1705_v14 = vld [vmem:[#allocation5 + $0x348] sm:$0xf0]  ;;  %v1983_v15 = vld [vmem:[#allocation5 + $0x3c4] sm:$0xf] }
  0x63   :  { %961 = vmatpush.bf16.msra.mxu3 %v1760_v57  ;;  %1029 = vmatpush.bf16.msra.mxu0 %v1588_v19  ;;  %v1468_v57 = vor.u32 %v1907_v44, %v1465_v45  ;;  %v1636_v62 = vor.u32 %v1949_v54, %v1633_v55  ;;  %v1617_v19 = vld [vmem:[#allocation5 + $0x298] sm:$0xf0]  ;;  %v1913_v44 = vld [vmem:[#allocation5 + $0x194] sm:$0xf]  ;;  %v2000_v50 = vld [vmem:[#allocation7 + $0x44] sm:$0xf0] }
  0x64   :  { %1043 = vmatpush.bf16.msra.mxu1 %v1652_v32  ;;  %v1620_v27 = vor.u32 %v1945_v18, %v1617_v19  ;;  %v1548_v32 = vor.u32 %v1927_v29, %v1545_v30  ;;  %v1489_v45 = vld [vmem:[#allocation5 + $0x198] sm:$0xf0]  ;;  %v1989_v55 = vld [vmem:[#allocation5 + $0x3f4] sm:$0xf]  ;;  %v1708_v18 = vor.u32 %v1967_v13, %v1705_v14  ;;  %v1979_v29 = vld [vmem:[#allocation5 + $0x3a4] sm:$0xf] }
  0x65   :  { %v1492_v47 = vor.u32 %v1913_v44, %v1489_v45  ;;  %v1729_v54 = vld [vmem:[#allocation5 + $0x378] sm:$0xf0]  ;;  %v1753_v30 = vld [vmem:[#allocation5 + $0x3a8] sm:$0xf0]  ;;  %v2003_v13 = vld [vmem:[#allocation7 + $0x64] sm:$0xf] }
  0x66   :  { %948 = vmatpush.bf16.msra.mxu2 %v1688_v4  ;;  %v1947_v4 = vld [vmem:[#allocation5 + $0x2a4] sm:$0xf]  ;;  %v1849_v14 = vld [vmem:[#allocation7 + $0x68] sm:$0xf0] }
  0x67   :  { %962 = vmatpush.bf16.msra.mxu3 %v1752_v8  ;;  %1030 = vmatpush.bf16.msra.mxu0 %v1580_v37  ;;  %v1903_v8 = vld [vmem:[#allocation5 + $0x144] sm:$0xf]  ;;  %v1628_v12 = vor.u32 %v1947_v4, %v1625_v5  ;;  %v1433_v37 = vld [vmem:[#allocation5 + $0x128] sm:$0xf0]  ;;  %v1969_v5 = vld [vmem:[#allocation5 + $0x354] sm:$0xf] }
  0x68   :  { %1044 = vmatpush.bf16.msra.mxu1 %v1644_v48  ;;  %v1436_v28 = vor.u32 %v1899_v36, %v1433_v37  ;;  %v1895_v48 = vld [vmem:[#allocation5 + $0x104] sm:$0xf]  ;;  %v1977_v36 = vld [vmem:[#allocation5 + $0x394] sm:$0xf]  ;;  %v1745_v37 = vld [vmem:[#allocation5 + $0x398] sm:$0xf0] }
  0x69   :  { %v1420_v58 = vor.u32 %v1895_v48, %v1417_v49  ;;  %v1831_v49 = vld [vmem:[#allocation7 + $0x40] sm:$0xf] }
  0x6a   :  { %949 = vmatpush.bf16.msra.mxu2 %v1680_v20  ;;  %v1452_v20 = vor.u32 %v1903_v8, %v1449_v9  ;;  %v1985_v9 = vld [vmem:[#allocation5 + $0x3d4] sm:$0xf]  ;;  %v1832_v52 = vor.u32 %v2000_v50, %v1831_v49 }
  0x6b   :  { %963 = vmatpush.bf16.msra.mxu3 %v1744_v26  ;;  %1031 = vmatpush.bf16.msra.mxu0 %v1572_v53  ;;  %v1917_v26 = vld [vmem:[#allocation5 + $0x1b4] sm:$0xf] }
  0x6c   :  { %1045 = vmatpush.bf16.msra.mxu1 %v1636_v62  ;;  %v1508_v35 = vor.u32 %v1917_v26, %v1505_v31  ;;  %v1973_v53 = vld [vmem:[#allocation5 + $0x374] sm:$0xf]  ;;  %v1721_v62 = vld [vmem:[#allocation5 + $0x368] sm:$0xf0]  ;;  %v1963_v26 = vld [vmem:[#allocation5 + $0x324] sm:$0xf] }
  0x6d   :  { %v1724_v0 = vor.u32 %v1971_v61, %v1721_v62  ;;  %v1807_v61 = vld [vmem:[#allocation7 + $0x10] sm:$0xf]  ;;  %v1994_v62 = vld [vmem:[#allocation7 + $0x14] sm:$0xf0] }
  0x6e   :  { %950 = vmatpush.bf16.msra.mxu2 %v1672_v38  ;;  %v1612_v38 = vor.u32 %v1943_v24, %v1609_v33  ;;  %v1756_v24 = vor.u32 %v1979_v29, %v1753_v30  ;;  %v1681_v33 = vld [vmem:[#allocation5 + $0x318] sm:$0xf0] }
  0x6f   :  { %964 = vmatpush.bf16.msra.mxu3 %v1736_v41  ;;  %1032 = vmatpush.bf16.msra.mxu0 %v1564_v2  ;;  %v1500_v41 = vor.u32 %v1915_v39, %v1497_v40  ;;  %v2006_v2 = vld [vmem:[#allocation7 + $0x74] sm:$0xf0]  ;;  %v1748_v40 = vor.u32 %v1977_v36, %v1745_v37 }
  0x70   :  { %1046 = vmatpush.bf16.msra.mxu1 %v1628_v12  ;;  %v1856_v8 = vor.u32 %v2006_v2, %v1855_v1  ;;  %v1799_v1 = vld [vmem:[#allocation7] sm:$0xf]  ;;  %v1992_v2 = vld [vmem:[#allocation7 + $0x4] sm:$0xf0] }
  0x71   :  { %951 = vmatmul.bf16.vlgmr.msra.gmra.mxu2 %v2182_v51 }
  0x72   :  { %999 = vmatpush.bf16.msrb.mxu2 %v1476_v42  ;;  %965 = vmatmul.bf16.vlgmr.msra.gmra.mxu3 %v2184_v56  ;;  %v1897_v42 = vld [vmem:[#allocation5 + $0x114] sm:$0xf] }
  0x73   :  { %1013 = vmatpush.bf16.msrb.mxu3 %v1540_v46  ;;  %1033 = vmatpush.bf16.msra.mxu0 %v1556_v16  ;;  %v1428_v46 = vor.u32 %v1897_v42, %v1425_v43  ;;  %v1769_v16 = vld [vmem:[#allocation5 + $0x3c8] sm:$0xf0]  ;;  %v1975_v42 = vld [vmem:[#allocation5 + $0x384] sm:$0xf] }
  0x74   :  { %1047 = vmatpush.bf16.msra.mxu1 %v1620_v27  ;;  %v1772_v19 = vor.u32 %v1983_v15, %v1769_v16  ;;  %v1689_v27 = vld [vmem:[#allocation5 + $0x328] sm:$0xf0]  ;;  %v1852_v15 = vor.u32 %v2003_v13, %v1849_v14 }
  0x75   :  { %v1692_v31 = vor.u32 %v1963_v26, %v1689_v27  ;;  %v1737_v43 = vld [vmem:[#allocation5 + $0x388] sm:$0xf0] }
  0x76   :  { %1000 = vmatpush.bf16.msrb.mxu2 %v1468_v57  ;;  %v1793_v57 = vld [vmem:[#allocation5 + $0x3f8] sm:$0xf0]  ;;  %v1740_v45 = vor.u32 %v1975_v42, %v1737_v43  ;;  %v1997_v43 = vld [vmem:[#allocation7 + $0x34] sm:$0xf] }
  0x77   :  { %1014 = vmatpush.bf16.msrb.mxu3 %v1532_v60  ;;  %1034 = vmatpush.bf16.msra.mxu0 %v1548_v32  ;;  %v1732_v60 = vor.u32 %v1973_v53, %v1729_v54  ;;  %v1961_v32 = vld [vmem:[#allocation5 + $0x314] sm:$0xf]  ;;  %v1823_v53 = vld [vmem:[#allocation7 + $0x30] sm:$0xf]  ;;  %v1998_v54 = vld [vmem:[#allocation7 + $0x34] sm:$0xf0] }
  0x78   :  { %1048 = vmatpush.bf16.msra.mxu1 %v1612_v38  ;;  %v1684_v39 = vor.u32 %v1961_v32, %v1681_v33 }
  0x7a   :  { %1001 = vmatpush.bf16.msrb.mxu2 %v1460_v6  ;;  %1035 = vmatmul.bf16.vlgmr.msra.gmra.mxu0 %v2168_v17  ;;  %v1796_v17 = vor.u32 %v1989_v55, %v1793_v57  ;;  %v1713_v6 = vld [vmem:[#allocation5 + $0x358] sm:$0xf0]  ;;  %v1824_v55 = vor.u32 %v1998_v54, %v1823_v53  ;;  %v1815_v57 = vld [vmem:[#allocation7 + $0x20] sm:$0xf]  ;;  %v1995_v53 = vld [vmem:[#allocation7 + $0x24] sm:$0xf] }
  0x7b   :  { %1015 = vmatpush.bf16.msrb.mxu3 %v1524_v10  ;;  %1049 = vmatmul.bf16.vlgmr.msra.gmra.mxu1 %v2170_v23  ;;  %v1785_v23 = vld [vmem:[#allocation5 + $0x3e8] sm:$0xf0]  ;;  %v1777_v10 = vld [vmem:[#allocation5 + $0x3d8] sm:$0xf0]  ;;  %v1716_v11 = vor.u32 %v1969_v5, %v1713_v6  ;;  %v2005_v5 = vld [vmem:[#allocation7 + $0x74] sm:$0xf] }
  0x7c   :  { %v1788_v4 = vor.u32 %v1987_v63, %v1785_v23  ;;  %1188 = vmatpush.bf16.xpose.msrb.mxu0 %v1856_v8  ;;  %v1780_v12 = vor.u32 %v1985_v9, %v1777_v10  ;;  %v1808_v63 = vor.u32 %v1994_v62, %v1807_v61  ;;  %v1857_v6 = vld [vmem:[#allocation7 + $0x78] sm:$0xf0]  ;;  %v1817_v54 = vld [vmem:[#allocation7 + $0x28] sm:$0xf0] }
  0x7d   :  { %v1860_v9 = vor.u32 %v2005_v5, %v1857_v6 }
  0x7e   :  { %1002 = vmatpush.bf16.msrb.mxu2 %v1452_v20  ;;  %v1965_v20 = vld [vmem:[#allocation5 + $0x334] sm:$0xf] }
  0x7f   :  { %1016 = vmatpush.bf16.msrb.mxu3 %v1516_v25  ;;  %v1700_v25 = vor.u32 %v1965_v20, %v1697_v21  ;;  %1202 = vmatpush.bf16.xpose.msrb.mxu1 %v1860_v9  ;;  %v2001_v20 = vld [vmem:[#allocation7 + $0x54] sm:$0xf]  ;;  %v1841_v21 = vld [vmem:[#allocation7 + $0x58] sm:$0xf0] }
  0x80   :  { %v1844_v26 = vor.u32 %v2001_v20, %v1841_v21 }
  0x82   :  { %1003 = vmatpush.bf16.msrb.mxu2 %v1444_v34  ;;  %v1847_v34 = vld [vmem:[#allocation7 + $0x60] sm:$0xf] }
  0x83   :  { %1017 = vmatpush.bf16.msrb.mxu3 %v1508_v35  ;;  %v2004_v35 = vld [vmem:[#allocation7 + $0x64] sm:$0xf0] }
  0x84   :  { %v1848_v38 = vor.u32 %v2004_v35, %v1847_v34  ;;  %v1999_v34 = vld [vmem:[#allocation7 + $0x44] sm:$0xf]  ;;  %v1833_v35 = vld [vmem:[#allocation7 + $0x48] sm:$0xf0] }
  0x85   :  { %v1836_v37 = vor.u32 %v1999_v34, %v1833_v35 }
  0x86   :  { %1004 = vmatpush.bf16.msrb.mxu2 %v1436_v28  ;;  %1189 = vmatpush.bf16.xpose.msrb.mxu0 %v1848_v38  ;;  %v1959_v28 = vld [vmem:[#allocation5 + $0x304] sm:$0xf] }
  0x87   :  { %1018 = vmatpush.bf16.msrb.mxu3 %v1500_v41  ;;  %v1673_v41 = vld [vmem:[#allocation5 + $0x308] sm:$0xf0]  ;;  %1203 = vmatpush.bf16.xpose.msrb.mxu1 %v1852_v15 }
  0x88   :  { %v1676_v44 = vor.u32 %v1959_v28, %v1673_v41 }
  0x8a   :  { %1005 = vmatpush.bf16.msrb.mxu2 %v1428_v46  ;;  %v1839_v46 = vld [vmem:[#allocation7 + $0x50] sm:$0xf] }
  0x8b   :  { %1019 = vmatpush.bf16.msrb.mxu3 %v1492_v47  ;;  %v2002_v47 = vld [vmem:[#allocation7 + $0x54] sm:$0xf0] }
  0x8c   :  { %v1840_v48 = vor.u32 %v2002_v47, %v1839_v46 }
  0x8e   :  { %1006 = vmatpush.bf16.msrb.mxu2 %v1420_v58  ;;  %1190 = vmatpush.bf16.xpose.msrb.mxu0 %v1840_v48  ;;  %v1996_v58 = vld [vmem:[#allocation7 + $0x24] sm:$0xf0] }
  0x8f   :  { %1020 = vmatpush.bf16.msrb.mxu3 %v1484_v59  ;;  %v1816_v59 = vor.u32 %v1996_v58, %v1815_v57  ;;  %1204 = vmatpush.bf16.xpose.msrb.mxu1 %v1844_v26  ;;  %v1820_v57 = vor.u32 %v1995_v53, %v1817_v54  ;;  %v1993_v58 = vld [vmem:[#allocation7 + $0x14] sm:$0xf] }
  0x91   :  { %1007 = vmatmul.bf16.vlgmr.msrb.gmra.mxu2 %v2174_v3  ;;  %v1981_v3 = vld [vmem:[#allocation5 + $0x3b4] sm:$0xf] }
  0x92   :  { %1055 = vmatpush.bf16.msra.mxu2 %v1732_v60  ;;  %1021 = vmatmul.bf16.vlgmr.msrb.gmra.mxu3 %v2176_v7  ;;  %v1764_v7 = vor.u32 %v1981_v3, %v1761_v22 }
  0x93   :  { %1069 = vmatpush.bf16.msra.mxu3 %v1796_v17 }
  0x96   :  { %1056 = vmatpush.bf16.msra.mxu2 %v1724_v0  ;;  %1191 = vmatpush.bf16.xpose.msrb.mxu0 %v1832_v52 }
  0x97   :  { %1070 = vmatpush.bf16.msra.mxu3 %v1788_v4  ;;  %v1800_v4 = vor.u32 %v1992_v2, %v1799_v1  ;;  %1205 = vmatpush.bf16.xpose.msrb.mxu1 %v1836_v37 }
  0x9a   :  { %1057 = vmatpush.bf16.msra.mxu2 %v1716_v11 }
  0x9b   :  { %1071 = vmatpush.bf16.msra.mxu3 %v1780_v12 }
  0x9e   :  { %1058 = vmatpush.bf16.msra.mxu2 %v1708_v18  ;;  %1192 = vmatpush.bf16.xpose.msrb.mxu0 %v1824_v55 }
  0x9f   :  { %1072 = vmatpush.bf16.msra.mxu3 %v1772_v19 }
  0xa2   :  { %1059 = vmatpush.bf16.msra.mxu2 %v1700_v25 }
  0xa3   :  { %1073 = vmatpush.bf16.msra.mxu3 %v1764_v7 }
  0xa6   :  { %1060 = vmatpush.bf16.msra.mxu2 %v1692_v31  ;;  %1193 = vmatpush.bf16.xpose.msrb.mxu0 %v1816_v59  ;;  %v1809_v59 = vld [vmem:[#allocation7 + $0x18] sm:$0xf0] }
  0xa7   :  { %1074 = vmatpush.bf16.msra.mxu3 %v1756_v24 }
  0xaa   :  { %1061 = vmatpush.bf16.msra.mxu2 %v1684_v39 }
  0xab   :  { %1075 = vmatpush.bf16.msra.mxu3 %v1748_v40 }
  0xae   :  { %1062 = vmatpush.bf16.msra.mxu2 %v1676_v44  ;;  %1194 = vmatpush.bf16.xpose.msrb.mxu0 %v1808_v63  ;;  %v1825_v44 = vld [vmem:[#allocation7 + $0x38] sm:$0xf0]  ;;  %v1991_v63 = vld [vmem:[#allocation7 + $0x4] sm:$0xf] }
  0xaf   :  { %1076 = vmatpush.bf16.msra.mxu3 %v1740_v45  ;;  %v1828_v48 = vor.u32 %v1997_v43, %v1825_v44 }
  0xb1   :  { %1063 = vmatmul.bf16.vlgmr.msra.gmra.mxu2 %v2182_v51  ;;  %v2194_v51 = vld [vmem:[#allocation7 + $0x80] sm:$0x11]  ;;  %1206 = vmatpush.bf16.xpose.msrb.mxu1 %v1828_v48 }
  0xb2   :  { %1077 = vmatmul.bf16.vlgmr.msra.gmra.mxu3 %v2184_v56  ;;  %v215_v0 = vunpack.c.l.bf16 %v2194_v51  ;;  %v216_v62 = vunpack.c.h.bf16 %v2194_v51 }
  0xb4   :  { %v868_v60 = vpop.f32.mrf.mxu2  ;;  %v217_v8 = vperm.slane %v215_v0, 0  ;;  %v218_v0 = vperm.slane %v216_v62, 0 }
  0xb5   :  { %v882_v17 = vpop.f32.mrf.mxu3 }
  0xb6   :  { %1195 = vmatpush.bf16.xpose.msrb.mxu0 %v1800_v4  ;;  %v869_v11 = vadd.f32 %v868_v60, %v217_v8  ;;  %v1812_v60 = vor.u32 %v1993_v58, %v1809_v59 }
  0xb7   :  { %v924_v19 = vpop.f32.mrf.mxu0 }
  0xb8   :  { %v883_v16 = vadd.f32 %v882_v17, %v869_v11 }
  0xb9   :  { %1207 = vmatpush.bf16.xpose.msrb.mxu1 %v1820_v57 }
  0xba   :  { %v938_v27 = vpop.f32.mrf.mxu1 }
  0xbc   :  { %v870_v56 = vpop.f32.mrf.mxu2 }
  0xbd   :  { %v884_v23 = vpop.f32.mrf.mxu3  ;;  %v871_v18 = vadd.f32 %v870_v56, %v217_v8  ;;  %v1801_v56 = vld [vmem:[#allocation7 + $0x8] sm:$0xf0] }
  0xbf   :  { %v885_v25 = vadd.f32 %v884_v23, %v871_v18  ;;  %v926_v24 = vpop.f32.mrf.mxu0  ;;  %v1804_v23 = vor.u32 %v1991_v63, %v1801_v56 }
  0xc1   :  { %1208 = vmatpush.bf16.xpose.msrb.mxu1 %v1812_v60 }
  0xc2   :  { %v940_v40 = vpop.f32.mrf.mxu1 }
  0xc9   :  { %1209 = vmatpush.bf16.xpose.msrb.mxu1 %v1804_v23 }
  0xd4   :  { %v896_v10 = vpop.f32.mrf.mxu2 }
  0xd5   :  { %v910_v12 = vpop.f32.mrf.mxu3  ;;  %v897_v3 = vadd.f32 %v896_v10, %v883_v16 }
  0xd7   :  { %v911_v29 = vadd.f32 %v910_v12, %v897_v3  ;;  %v980_v17 = vpop.f32.mrf.mxu0 }
  0xd8   :  { %v981_v4 = vadd.f32 %v980_v17, %v218_v0 }
  0xd9   :  { %v925_v31 = vadd.f32 %v924_v19, %v911_v29 }
  0xda   :  { %v994_v61 = vpop.f32.mrf.mxu1 }
  0xdb   :  { %v939_v38 = vadd.f32 %v938_v27, %v925_v31  ;;  %v995_v8 = vadd.f32 %v994_v61, %v981_v4 }
  0xdc   :  { %v898_v22 = vpop.f32.mrf.mxu2 }
  0xdd   :  { %v912_v7 = vpop.f32.mrf.mxu3  ;;  %v899_v30 = vadd.f32 %v898_v22, %v885_v25 }
  0xdf   :  { %v913_v32 = vadd.f32 %v912_v7, %v899_v30  ;;  %v982_v1 = vpop.f32.mrf.mxu0 }
  0xe0   :  { %v983_v9 = vadd.f32 %v982_v1, %v218_v0 }
  0xe1   :  { %v927_v39 = vadd.f32 %v926_v24, %v913_v32 }
  0xe2   :  { %v996_v6 = vpop.f32.mrf.mxu1 }
  0xe3   :  { %v941_v41 = vadd.f32 %v940_v40, %v927_v39  ;;  %v997_v11 = vadd.f32 %v996_v6, %v983_v9  ;;  %v2125_v6 = vmov 0.0  }
  0xf4   :  { %v952_v33 = vpop.f32.mrf.mxu2 }
  0xf5   :  { %v966_v36 = vpop.f32.mrf.mxu3  ;;  %v953_v28 = vadd.f32 %v952_v33, %v939_v38 }
  0xf7   :  { %v967_v45 = vadd.f32 %v966_v36, %v953_v28  ;;  %v1036_v10 = vpop.f32.mrf.mxu0  ;;  %v1105_v36 = vld [vmem:[#allocation7 + $0x80] sm:$0x1] }
  0xf8   :  { %v1050_v15 = vpop.f32.mrf.mxu1  ;;  %v1106_v37 = vunpack.c.l.bf16 %v1105_v36 }
  0xf9   :  { %v1083_v50 = vmax.f32 %v967_v45, 0.0 }
  0xfa   :  { %v1107_v39 = vperm.slane %v1106_v37, 1 }
  0xfc   :  { %v954_v42 = vpop.f32.mrf.mxu2 }
  0xfd   :  { %v955_v46 = vadd.f32 %v954_v42, %v941_v41  ;;  %v968_v47 = vpop.f32.mrf.mxu3 }
  0xff   :  { %v969_v49 = vadd.f32 %v968_v47, %v955_v46  ;;  %v1038_v20 = vpop.f32.mrf.mxu0  ;;  %v1216_v46 = vlaneseq }
 0x100   :  { %v1052_v7 = vpop.f32.mrf.mxu1 }
 0x101   :  { %v1085_v52 = vmax.f32 %v969_v49, 0.0  ;;  %v1217_v47 = vand.u32 127, %v1216_v46 }
 0x103   :  { %v1087_v55 = vpack.c.bf16 %v1085_v52, %v1083_v50 }
 0x105   :  { %1196 = vmatmul.bf16.vlgmr.msrb.gmra.mxu0 %v1087_v55 }
 0x114   :  { %v1008_v2 = vpop.f32.mrf.mxu2 }
 0x115   :  { %v1022_v5 = vpop.f32.mrf.mxu3  ;;  %v1009_v12 = vadd.f32 %v1008_v2, %v995_v8 }
 0x117   :  { %v1023_v16 = vadd.f32 %v1022_v5, %v1009_v12 }
 0x119   :  { %v1037_v18 = vadd.f32 %v1036_v10, %v1023_v16 }
 0x11b   :  { %v1051_v22 = vadd.f32 %v1050_v15, %v1037_v18 }
 0x11c   :  { %v1010_v13 = vpop.f32.mrf.mxu2 }
 0x11d   :  { %v1024_v14 = vpop.f32.mrf.mxu3  ;;  %v1011_v51 = vadd.f32 %v1010_v13, %v997_v11 }
 0x11f   :  { %v1025_v19 = vadd.f32 %v1024_v14, %v1011_v51 }
 0x121   :  { %v1039_v25 = vadd.f32 %v1038_v20, %v1025_v19 }
 0x123   :  { %v1053_v27 = vadd.f32 %v1052_v7, %v1039_v25 }
 0x134   :  { %v1064_v21 = vpop.f32.mrf.mxu2 }
 0x135   :  { %v1078_v3 = vpop.f32.mrf.mxu3  ;;  %v1065_v26 = vadd.f32 %v1064_v21, %v1051_v22 }
 0x137   :  { %v1079_v30 = vadd.f32 %v1078_v3, %v1065_v26 }
 0x139   :  { %v1084_v33 = vmax.f32 %v1079_v30, 0.0 }
 0x13c   :  { %v1066_v29 = vpop.f32.mrf.mxu2 }
 0x13d   :  { %v1067_v31 = vadd.f32 %v1066_v29, %v1053_v27  ;;  %v1080_v32 = vpop.f32.mrf.mxu3 }
 0x13f   :  { %v1081_v24 = vadd.f32 %v1080_v32, %v1067_v31 }
 0x141   :  { %v1086_v34 = vmax.f32 %v1081_v24, 0.0 }
 0x143   :  { %v1088_v35 = vpack.c.bf16 %v1086_v34, %v1084_v33 }
 0x145   :  { %1210 = vmatmul.bf16.vlgmr.msrb.gmra.mxu1 %v1088_v35 }
 0x182   :  { %v1197_v38 = vpop.f32.mrf.mxu0 }
 0x183   :  { %v1198_v40 = vadd.f32 %v1197_v38, %v1107_v39 }
 0x18a   :  { %v1199_v42 = vpop.f32.mrf.mxu0 }
 0x18b   :  { %v1200_v43 = vadd.f32 %v1199_v42, %v1107_v39 }
 0x1c2   :  { %v1211_v28 = vpop.f32.mrf.mxu1 }
 0x1c3   :  { %v1212_v41 = vadd.f32 %v1211_v28, %v1198_v40 }
 0x1c5   :  { %1254 = vst [vmem:[#allocation8] sm:$0xff] %v1212_v41  ;;  %1218 = vmax.xlane.f32.xlu0 %v1212_v41 }
 0x1ca   :  { %v1213_v44 = vpop.f32.mrf.mxu1 }
 0x1cb   :  { %v1214_v45 = vadd.f32 %v1213_v44, %v1200_v43 }
 0x1cd   :  { %1255 = vst [vmem:[#allocation8 + $0x8] sm:$0xff] %v1214_v45  ;;  %1220 = vmax.xlane.f32.xlu0 %v1214_v45 }
 0x238   :  { %v1219_v48 = vpop.xlane.xlu0 %1218 }
 0x239   :  { %vm1222_vm0 = vcmp.eq.f32.partialorder %v1212_v41, %v1219_v48 }
 0x23a   :  { %v1224_v49 = vsel %vm1222_vm0, %v1217_v47, 128 }
 0x23b   :  { %v1227_v50 = vshra.s32 %v1224_v49, 16  ;;  %v1226_v58 = vand.u32 65535, %v1224_v49 }
 0x23d   :  { %v1229_v52 = vcvt.s32.f32 %v1227_v50  ;;  %v1228_v60 = vcvt.s32.f32 %v1226_v58 }
 0x23f   :  { %1230 = vmin.xlane.f32.xlu1 %v1229_v52 }
 0x240   :  { %v1221_v53 = vpop.xlane.xlu0 %1220 }
 0x241   :  { %vm1223_vm1 = vcmp.eq.f32.partialorder %v1214_v45, %v1221_v53 }
 0x242   :  { %v1225_v54 = vsel %vm1223_vm1, %v1217_v47, 128 }
 0x243   :  { %v1241_v55 = vshra.s32 %v1225_v54, 16  ;;  %v1240_v61 = vand.u32 65535, %v1225_v54 }
 0x245   :  { %v1243_v57 = vcvt.s32.f32 %v1241_v55  ;;  %v1242_v63 = vcvt.s32.f32 %v1240_v61 }
 0x247   :  { %1244 = vmin.xlane.f32.xlu1 %v1243_v57 }
 0x2b2   :  { %v1231_v59 = vpop.xlane.xlu1 %1230 }
 0x2b3   :  { %vm1232_vm2 = vcmp.eq.f32.partialorder %v1229_v52, %v1231_v59  ;;  %v1237_v23 = vcvt.f32.s32 %v1231_v59 }
 0x2b4   :  { %v1233_v17 = vsel %vm1232_vm2, %v1228_v60, inf }
 0x2b5   :  { %1234 = vmin.xlane.f32.xlu2 %v1233_v17  ;;  %v1238_v1 = vshll.u32 %v1237_v23, 16 }
 0x2ba   :  { %v1245_v62 = vpop.xlane.xlu1 %1244 }
 0x2bb   :  { %vm1246_vm3 = vcmp.eq.f32.partialorder %v1243_v57, %v1245_v62  ;;  %v1251_v5 = vcvt.f32.s32 %v1245_v62 }
 0x2bc   :  { %v1247_v56 = vsel %vm1246_vm3, %v1242_v63, inf }
 0x2bd   :  { %1248 = vmin.xlane.f32.xlu2 %v1247_v56  ;;  %v1252_v10 = vshll.u32 %v1251_v5, 16 }
 0x328   :  { %v1235_v0 = vpop.xlane.xlu2 %1234 }
 0x329   :  { %v1236_v2 = vcvt.f32.s32 %v1235_v0 }
 0x32b   :  { %v1239_v4 = vadd.s32 %v1238_v1, %v1236_v2 }
 0x32d   :  { %vm1256_vm4 = vcmp.eq.s32.totalorder %v1217_v47, %v1239_v4 }
 0x32e   :  { %v1861_v8 = vsel %vm1256_vm4, 1.0, %v2125_v6 }
 0x32f   :  { %1263 = vst [vmem:[#allocation8 + $0x10] sm:$0xff] %v1861_v8 }
 0x330   :  { %v1249_v9 = vpop.xlane.xlu2 %1248 }
 0x331   :  { %v1250_v11 = vcvt.f32.s32 %v1249_v9 }
 0x333   :  { %v1253_v12 = vadd.s32 %v1252_v10, %v1250_v11 }
 0x335   :  { %vm1257_vm5 = vcmp.eq.s32.totalorder %v1217_v47, %v1253_v12 }
 0x336   :  { %v1862_v13 = vsel %vm1257_vm5, 1.0, %v2125_v6 }
 0x337   :  { %1264 = vst [vmem:[#allocation8 + $0x18] sm:$0xff] %v1862_v13 }
 0x338   :  { %1277 = dma.vmem_to_hbm [thread:$0]  %s1270_s29, 512, %s1272_s5, [#allocation4], %s2119_s20, %s2119_s20, %s2120_s21  }
 0x339   :  { %2116 = dma.done.wait [#allocation4], 512  }
 0x33a   :  { %2117 = vsyncadd [#allocation4], 4294966784 }
 0x33b   :  { %1282 = vsyncpa [#allocation3], 1 }
 0x33c   :  { %1283 = vsyncpa [#allocation6], 1 }
 0x33d   :  { %1284 = vsyncpa [#allocation4], 1 }

</bundles_post_ra>
